<compile_context>
chip_gen: v6e
topology: v6e:2x2x1
jax: 0.10.0
libtpu: 0.0.40
codegen_flags: <defaults>
</compile_context>

<pallas_src>
import functools

import jax
import jax.numpy as jnp
from jax.experimental import pallas as pl
from jax.experimental.pallas import tpu as pltpu


def _round_up(x, m):
    return ((x + m - 1) // m) * m


def _label_smoothing_kernel(preds_ref, tgt_ref, out_ref, *, smoothing, n_valid, tile_n):
    i = pl.program_id(0)

    x = preds_ref[...].astype(jnp.float32)            # (TN, C), f32 math in-kernel
    c = x.shape[-1]

    # log_softmax pieces (numerically stable); never materialize full log_prob
    # beyond z itself.
    m = jnp.max(x, axis=-1, keepdims=True)            # (TN, 1)
    z = x - m                                         # (TN, C)
    lse = jnp.log(jnp.sum(jnp.exp(z), axis=-1, keepdims=True))   # (TN, 1)

    # z at the target class, via a masked lane select + lane reduce
    tgt = tgt_ref[...]                                 # (TN, 1) int32
    col = jax.lax.broadcasted_iota(jnp.int32, x.shape, 1)
    z_tgt = jnp.sum(jnp.where(col == tgt, z, 0.0), axis=-1, keepdims=True)  # (TN, 1)
    sum_z = jnp.sum(z, axis=-1, keepdims=True)                               # (TN, 1)

    off_val = float(smoothing) / (c - 1.0) if c > 1 else 0.0   # guard C==1
    on_val = 1.0 - float(smoothing)

    # sum_c log_prob = sum_c z - C * lse ;  log_prob[tgt] = z[tgt] - lse
    sum_logprob = sum_z - jnp.float32(c) * lse
    logprob_tgt = z_tgt - lse
    row_loss = -(jnp.float32(off_val) * sum_logprob
                 + jnp.float32(on_val - off_val) * logprob_tgt)   # (TN, 1)

    # mask padded tail rows so they contribute 0
    row_idx = i * tile_n + jax.lax.broadcasted_iota(jnp.int32, row_loss.shape, 0)
    row_loss = jnp.where(row_idx < n_valid, row_loss, 0.0)

    # per-block partial sum, written as a lane-dense (1, 8, 128) slab
    out_ref[...] = jnp.broadcast_to(jnp.sum(row_loss), out_ref.shape)


def label_smoothing_loss(preds, target, smoothing=0.0, *, tile_n=None):
    """preds: (N, C) float (f32 or bf16), target: (N,) int -> scalar f32 loss."""
    n, c = preds.shape
    itemsize = jnp.dtype(preds.dtype).itemsize

    if tile_n is None:
        # Conservative VMEM budget: account for lane padding of the class axis
        # and for f32 temporaries the compiler keeps alive for large tiles.
        c_pad = _round_up(c, 128)
        per_tile_budget = 4 * 1024 * 1024                  # bytes per f32 tile copy
        tile_n = per_tile_budget // max(1, c_pad * 4)
        tile_n = int(max(8, min(2048, (tile_n // 8) * 8)))
    # never tile larger than the (padded) batch
    tile_n = min(tile_n, _round_up(n, 8))
    tile_n = max(8, (tile_n // 8) * 8)

    n_pad = _round_up(n, tile_n)
    num_blocks = n_pad // tile_n

    preds_p = preds if n_pad == n else jnp.pad(preds, ((0, n_pad - n), (0, 0)))
    tgt2d = target.astype(jnp.int32).reshape(n, 1)
    tgt_p = tgt2d if n_pad == n else jnp.pad(tgt2d, ((0, n_pad - n), (0, 0)))

    kernel = functools.partial(
        _label_smoothing_kernel,
        smoothing=float(smoothing),
        n_valid=n,
        tile_n=tile_n,
    )

    partials = pl.pallas_call(
        kernel,
        out_shape=jax.ShapeDtypeStruct((num_blocks, 8, 128), jnp.float32),
        grid_spec=pltpu.PrefetchScalarGridSpec(
            num_scalar_prefetch=0,
            grid=(num_blocks,),
            in_specs=[
                pl.BlockSpec((tile_n, c), lambda i: (i, 0)),
                pl.BlockSpec((tile_n, 1), lambda i: (i, 0)),
            ],
            out_specs=pl.BlockSpec((1, 8, 128), lambda i: (i, 0, 0)),
        ),
        compiler_params=pltpu.CompilerParams(
            dimension_semantics=("parallel",),      # megacore-shardable on v7x
            vmem_limit_bytes=40 * 1024 * 1024,      # raise v5e's 16 MiB default, safe on v7x
        ),
    )(preds_p, tgt_p)

    # tiny final reduction + mean in the wrapper
    return partials[:, 0, 0].sum() / jnp.float32(n)


def _reference(preds, target, smoothing):
    # pure-JAX reference mirroring the PyTorch module
    log_prob = jax.nn.log_softmax(preds.astype(jnp.float32), axis=-1)
    c = preds.shape[-1]
    smooth = jnp.full(preds.shape, smoothing / (c - 1.0), dtype=jnp.float32)
    smooth = smooth.at[jnp.arange(preds.shape[0]), target].set(1.0 - smoothing)
    return jnp.mean(jnp.sum(-smooth * log_prob, axis=-1))


if __name__ == "__main__":
    key = jax.random.PRNGKey(0)
    k1, k2 = jax.random.split(key)
    smoothing = 0.1

    # Case 1: f32, batch divisible by 8
    N, C = 16, 32
    preds = jax.random.normal(k1, (N, C), dtype=jnp.float32)
    target = jax.random.randint(k2, (N,), 0, C, dtype=jnp.int32)
    loss = jax.block_until_ready(label_smoothing_loss(preds, target, smoothing=smoothing))
    ref = _reference(preds, target, smoothing)
    assert jnp.allclose(loss, ref, atol=1e-5, rtol=1e-5), (loss, ref)

    # Case 2: f32, ragged batch (exercises tail padding/masking)
    N2 = 13
    preds2 = preds[:N2]
    target2 = target[:N2]
    loss2 = jax.block_until_ready(label_smoothing_loss(preds2, target2, smoothing=smoothing))
    ref2 = _reference(preds2, target2, smoothing)
    assert jnp.allclose(loss2, ref2, atol=1e-5, rtol=1e-5), (loss2, ref2)

    # Case 3: bf16 preds (halved HBM traffic; f32 math in-kernel)
    preds_bf16 = preds.astype(jnp.bfloat16)
    loss3 = jax.block_until_ready(label_smoothing_loss(preds_bf16, target, smoothing=smoothing))
    ref3 = _reference(preds_bf16, target, smoothing)
    assert jnp.allclose(loss3, ref3, atol=2e-2, rtol=2e-2), (loss3, ref3)

    print("KERNEL_OK")
</pallas_src>

<mosaic_0001>
module attributes {stable_mosaic.version = 11 : i64} {
  func.func @_label_smoothing_kernel(%arg0: i32, %arg1: memref<16x32xf32, #tpu.memory_space<vmem>>, %arg2: memref<16x1xi32, #tpu.memory_space<vmem>>, %arg3: memref<1x8x128xf32, #tpu.memory_space<vmem>>) attributes {dimension_semantics = [#tpu.dimension_semantics<parallel>], iteration_bounds = array<i64: 1>, scalar_prefetch = 0 : i64, scratch_operands = 0 : i64, tpu.core_type = #tpu.core_type<tc>, window_params = [{transform_indices = @transform_0, window_bounds = array<i64: 16, 32>}, {transform_indices = @transform_1, window_bounds = array<i64: 16, 1>}, {transform_indices = @transform_2, window_bounds = array<i64: 1, 8, 128>}]} {
    %c0 = arith.constant 0 : index
    %c0_0 = arith.constant 0 : index
    %0 = vector.load %arg1[%c0, %c0_0] : memref<16x32xf32, #tpu.memory_space<vmem>>, vector<16x32xf32>
    %cst = arith.constant dense<0xFF800000> : vector<16xf32>
    %1 = vector.multi_reduction <maximumf>, %0, %cst [1] : vector<16x32xf32> to vector<16xf32>
    %2 = vector.shape_cast %1 : vector<16xf32> to vector<16x1xf32>
    %3 = vector.broadcast %2 : vector<16x1xf32> to vector<16x32xf32>
    %4 = arith.subf %0, %3 : vector<16x32xf32>
    %5 = math.exp %4 : vector<16x32xf32>
    %cst_1 = arith.constant dense<0.000000e+00> : vector<16xf32>
    %6 = vector.multi_reduction <add>, %5, %cst_1 [1] : vector<16x32xf32> to vector<16xf32>
    %7 = vector.shape_cast %6 : vector<16xf32> to vector<16x1xf32>
    %8 = math.log %7 : vector<16x1xf32>
    %c0_2 = arith.constant 0 : index
    %c0_3 = arith.constant 0 : index
    %9 = vector.load %arg2[%c0_2, %c0_3] : memref<16x1xi32, #tpu.memory_space<vmem>>, vector<16x1xi32>
    %10 = tpu.iota {dimensions = array<i32: 1>} : vector<16x32xi32>
    %11 = vector.broadcast %9 : vector<16x1xi32> to vector<16x32xi32>
    %12 = arith.cmpi eq, %10, %11 : vector<16x32xi32>
    %cst_4 = arith.constant 0.000000e+00 : f32
    %13 = vector.broadcast %cst_4 : f32 to vector<16x32xf32>
    %14 = arith.select %12, %4, %13 : vector<16x32xi1>, vector<16x32xf32>
    %cst_5 = arith.constant dense<0.000000e+00> : vector<16xf32>
    %15 = vector.multi_reduction <add>, %14, %cst_5 [1] : vector<16x32xf32> to vector<16xf32>
    %16 = vector.shape_cast %15 : vector<16xf32> to vector<16x1xf32>
    %cst_6 = arith.constant dense<0.000000e+00> : vector<16xf32>
    %17 = vector.multi_reduction <add>, %4, %cst_6 [1] : vector<16x32xf32> to vector<16xf32>
    %18 = vector.shape_cast %17 : vector<16xf32> to vector<16x1xf32>
    %cst_7 = arith.constant 3.200000e+01 : f32
    %19 = vector.broadcast %cst_7 : f32 to vector<16x1xf32>
    %20 = arith.mulf %19, %8 : vector<16x1xf32>
    %21 = arith.subf %18, %20 : vector<16x1xf32>
    %22 = arith.subf %16, %8 : vector<16x1xf32>
    %cst_8 = arith.constant 0.0032258064 : f32
    %23 = vector.broadcast %cst_8 : f32 to vector<16x1xf32>
    %24 = arith.mulf %23, %21 : vector<16x1xf32>
    %cst_9 = arith.constant 0.896774172 : f32
    %25 = vector.broadcast %cst_9 : f32 to vector<16x1xf32>
    %26 = arith.mulf %25, %22 : vector<16x1xf32>
    %27 = arith.addf %24, %26 : vector<16x1xf32>
    %cst_10 = arith.constant 0.000000e+00 : f32
    %28 = vector.broadcast %cst_10 : f32 to vector<16x1xf32>
    %29 = arith.subf %28, %27 : vector<16x1xf32>
    %c16_i32 = arith.constant 16 : i32
    %30 = arith.muli %arg0, %c16_i32 : i32
    %31 = tpu.iota {dimensions = array<i32: 0>} : vector<16x1xi32>
    %32 = vector.broadcast %30 : i32 to vector<16x1xi32>
    %33 = arith.addi %32, %31 : vector<16x1xi32>
    %c16_i32_11 = arith.constant 16 : i32
    %34 = vector.broadcast %c16_i32_11 : i32 to vector<16x1xi32>
    %35 = arith.cmpi slt, %33, %34 : vector<16x1xi32>
    %cst_12 = arith.constant 0.000000e+00 : f32
    %36 = vector.broadcast %cst_12 : f32 to vector<16x1xf32>
    %37 = arith.select %35, %29, %36 : vector<16x1xi1>, vector<16x1xf32>
    %38 = vector.shape_cast %37 : vector<16x1xf32> to vector<1x16x1xf32>
    %cst_13 = arith.constant dense<0.000000e+00> : vector<1xf32>
    %39 = vector.multi_reduction <add>, %38, %cst_13 [1, 2] : vector<1x16x1xf32> to vector<1xf32>
    %40 = vector.shape_cast %39 : vector<1xf32> to vector<1x1x1xf32>
    %41 = vector.extract %40[0, 0, 0] : f32 from vector<1x1x1xf32>
    %42 = vector.broadcast %41 : f32 to vector<1x8x128xf32>
    %c0_14 = arith.constant 0 : index
    %c0_15 = arith.constant 0 : index
    %c0_16 = arith.constant 0 : index
    %43 = vector.load %arg3[%c0_14, %c0_15, %c0_16] : memref<1x8x128xf32, #tpu.memory_space<vmem>>, vector<1x8x128xf32>
    tpu.vector_store %arg3[%c0_14, %c0_15, %c0_16], %42 {strides = array<i32>} : memref<1x8x128xf32, #tpu.memory_space<vmem>>, vector<1x8x128xf32>,
    return
  }
  func.func @transform_0(%arg0: i32) -> (i32, i32) {
    %c0_i32 = arith.constant 0 : i32
    %c0_i32_0 = arith.constant 0 : i32
    return %arg0, %c0_i32 : i32, i32
  }
  func.func @transform_1(%arg0: i32) -> (i32, i32) {
    %c0_i32 = arith.constant 0 : i32
    %c0_i32_0 = arith.constant 0 : i32
    return %arg0, %c0_i32 : i32, i32
  }
  func.func @transform_2(%arg0: i32) -> (i32, i32, i32) {
    %c0_i32 = arith.constant 0 : i32
    %c0_i32_0 = arith.constant 0 : i32
    %c0_i32_1 = arith.constant 0 : i32
    return %arg0, %c0_i32, %c0_i32_0 : i32, i32, i32
  }
}

</mosaic_0001>

<bundles_post_ra>
// kernel: tpu_custom_call.1
= control target key start
LH: loop header
LB: loop body
LE: loop exit
PB: predicated region body
PF: predicated region fallthrough
CT: control target
= control target key end

     0   :  { %vm14_vm0 = vcmask 261120   ;;  %v153_v4 = vmov 0   ;;  %s193_s0 = inlined_call_operand.vmem [shape: f32[16,32], index: 0, kind: input, shape index: {}]   ;;  %s194_s1 = inlined_call_operand.vmem [shape: s32[16,1], index: 1, kind: input, shape index: {}]   ;;  %s195_s2 = inlined_call_operand.hbm [shape: f32[1,8,128], index: 2, kind: output, shape index: {}]  }
   0x1   :  { %v12_v0 = vld [vmem:[%s193_s0] sm:$0xff]  ;;  %v13_v1 = vld [vmem:[%s193_s0 + $0x8] sm:$0xff]  ;;  %121 = vset.pattern.permute.xlu1 %v153_v4  ;;  %122 = vset.pattern.permute.xlu0 %v153_v4 }
   0x2   :  { %v37_v2 = vld [vmem:[%s194_s1] sm:$0xff]  ;;  %v15_v3 = vsel %vm14_vm0, %v12_v0, -inf }
   0x3   :  { %7 = vsyncpa [#allocation3], 0  ;;  %16 = vmax.xlane.f32.xlu0 %v15_v3  ;;  %42 = vperm.xlu1 %121, %v37_v2   ;;  %v18_v5 = vsel %vm14_vm0, %v13_v1, -inf  ;;  %v38_v6 = vld [vmem:[%s194_s1 + $0x8] sm:$0xff]  ;;  %v39_v13 = vlaneseq  ;;  %vm88_vm3 = vcmask 7168   ;;  %s154_s0 = smov [#allocation2]  }
   0x4   :  { %s109_s1 = sshll.u32 %s154_s0, 4  ;;  %s110_s1 = int_to_ptr.vmem [resolvable:$true] %s109_s1 }
   0x5   :  { %v40_v15 = vand.u32 127, %v39_v13  ;;  %s131_s18 = scalar_lea.vmem %s110_s1, 128  ;;  %p136_p1 = scmp.lt.s32.totalorder %s110_s1, %s110_s1 }
   0x6   :  { %p132_p0 = scmp.ne.s32.totalorder %s110_s1, %s131_s18  ;;  %p137_p2 = scmp.lt.s32.totalorder %s131_s18, %s131_s18 }
   0x7   :  { %19 = vmax.xlane.f32.xlu0 %v18_v5  ;;  %45 = vperm.xlu1 %121, %v38_v6  }
   0x8   :  { %p138_p3 = por %p137_p2, %p136_p1 }
   0xa   :  { %p139_p4 = pnand %p138_p3, %p132_p0 }
  0x7e   :  { %v43_v14 = vpop.permute.xlu1 %42 }
  0x7f   :  { %vm47_vm1 = vcmp.eq.s32.totalorder %v40_v15, %v43_v14 }
  0x82   :  { %v46_v17 = vpop.permute.xlu1 %45 }
  0x83   :  { %vm48_vm2 = vcmp.eq.s32.totalorder %v40_v15, %v46_v17 }
  0x8c   :  { %v17_v7 = vpop.xlane.xlu0 %16 }
  0x8d   :  { %v21_v8 = vsub.f32 %v12_v0, %v17_v7 }
  0x8f   :  { %v23_v9 = vmul.f32 1.442695, %v21_v8  ;;  %v49_v19 = vsel %vm47_vm1, %v21_v8, 0.0  ;;  %v57_v25 = vsel %vm14_vm0, %v21_v8, 0.0 }
  0x90   :  { %v20_v10 = vpop.xlane.xlu0 %19  ;;  %v51_v21 = vsel %vm14_vm0, %v49_v19, 0.0 }
  0x91   :  { %123 = vpow2.f32 %v23_v9  ;;  %v22_v11 = vsub.f32 %v13_v1, %v20_v10 }
  0x93   :  { %v25_v12 = vmul.f32 1.442695, %v22_v11  ;;  %v50_v23 = vsel %vm48_vm2, %v22_v11, 0.0  ;;  %v60_v26 = vsel %vm14_vm0, %v22_v11, 0.0 }
  0x94   :  { %v54_v24 = vsel %vm14_vm0, %v50_v23, 0.0 }
  0x95   :  { %125 = vpow2.f32 %v25_v12 }
  0x9e   :  { %v124_v16 = vpop.eup %123 }
  0x9f   :  { %v27_v18 = vsel %vm14_vm0, %v124_v16, 0.0 }
  0xa0   :  { %28 = vadd.xlane.f32.xlu0 %v27_v18 }
  0xa2   :  { %v126_v20 = vpop.eup %125 }
  0xa3   :  { %v30_v22 = vsel %vm14_vm0, %v126_v20, 0.0 }
  0xa4   :  { %52 = vadd.xlane.f32.xlu0 %v51_v21  ;;  %31 = vadd.xlane.f32.xlu1 %v30_v22 }
  0xa8   :  { %55 = vadd.xlane.f32.xlu0 %v54_v24 }
  0xac   :  { %58 = vadd.xlane.f32.xlu0 %v57_v25 }
  0xb0   :  { %61 = vadd.xlane.f32.xlu0 %v60_v26 }
 0x129   :  { %v29_v27 = vpop.xlane.xlu0 %28 }
 0x12a   :  { %127 = vlog2.f32 %v29_v27 }
 0x12d   :  { %v32_v28 = vpop.xlane.xlu1 %31  ;;  %v53_v29 = vpop.xlane.xlu0 %52 }
 0x12e   :  { %129 = vlog2.f32 %v32_v28 }
 0x131   :  { %v56_v30 = vpop.xlane.xlu0 %55 }
 0x135   :  { %v59_v33 = vpop.xlane.xlu0 %58 }
 0x137   :  { %v128_v31 = vpop.eup %127 }
 0x138   :  { %v34_v32 = vmul.f32 0.6931472, %v128_v31 }
 0x139   :  { %v62_v43 = vpop.xlane.xlu0 %61 }
 0x13a   :  { %v67_v34 = vsub.f32 %v53_v29, %v34_v32  ;;  %v63_v35 = vmul.f32 32.0, %v34_v32 }
 0x13b   :  { %v130_v36 = vpop.eup %129 }
 0x13c   :  { %v36_v37 = vmul.f32 0.6931472, %v130_v36  ;;  %v65_v38 = vsub.f32 %v59_v33, %v63_v35  ;;  %v71_v39 = vmul.f32 0.8967742, %v67_v34 }
 0x13e   :  { %v68_v40 = vsub.f32 %v56_v30, %v36_v37  ;;  %v69_v41 = vmul.f32 0.0032258064, %v65_v38  ;;  %v64_v42 = vmul.f32 32.0, %v36_v37 }
 0x140   :  { %v73_v44 = vadd.f32 %v71_v39, %v69_v41  ;;  %v66_v45 = vsub.f32 %v62_v43, %v64_v42  ;;  %v72_v46 = vmul.f32 0.8967742, %v68_v40 }
 0x142   :  { %v70_v47 = vmul.f32 0.0032258064, %v66_v45  ;;  %v75_v48 = vsub.f32 0.0, %v73_v44 }
 0x144   :  { %v74_v49 = vadd.f32 %v72_v46, %v70_v47  ;;  %v89_v51 = vsel %vm88_vm3, %v75_v48, 0.0 }
 0x146   :  { %v76_v50 = vsub.f32 0.0, %v74_v49 }
 0x148   :  { %v90_v52 = vsel %vm88_vm3, %v76_v50, 0.0 }
 0x149   :  { %v91_v53 = vadd.f32 %v90_v52, %v89_v51 }
 0x14b   :  { %92 = vadd.xlane.f32.xlu0 %v91_v53 }
 0x1d4   :  { %v93_v54 = vpop.xlane.xlu0 %92 }
 0x1d5   :  { %v94_v55 = vrot.slane %v93_v54, 4 }
 0x1d7   :  { %v95_v56 = vadd.f32 %v94_v55, %v93_v54 }
 0x1d9   :  { %v96_v57 = vrot.slane %v95_v56, 2 }
 0x1db   :  { %v97_v58 = vadd.f32 %v96_v57, %v95_v56 }
 0x1dd   :  { %v98_v59 = vrot.slane %v97_v58, 1 }
 0x1df   :  { %v99_v60 = vadd.f32 %v98_v59, %v97_v58 }
 0x1e1   :  { %117 = vpush %v99_v60 }
 0x212   :  { %s118_s17 = spop %117 }
 0x213   :  { %v101_v61 = vstv %s118_s17 }
 0x214   :  { %102 = vst [vmem:[#allocation2] sm:$0xff] %v101_v61 }
 0x215   :  { %142 = shalt.err (!%p139_p4)
}
 0x216   :  { %112 = dma.vmem_to_hbm [thread:$0]  %s110_s1, 128, %s195_s2, [#allocation3]  }
 0x217   :  { %151 = dma.done.wait [#allocation3], 128  }
 0x218   :  { %152 = vsyncadd [#allocation3], 4294967168 }
 0x219   :  { %116 = vsyncpa [#allocation3], 1 }

</bundles_post_ra>
